<compile_context>
chip_gen: v5e
topology: v5e:2x2
jax: 0.10.0
libtpu: 0.0.40
codegen_flags: <defaults>
</compile_context>

<pallas_src>
import functools

import jax
import jax.numpy as jnp
import numpy as np
from jax.experimental import pallas as pl
from jax.experimental.pallas import tpu as pltpu


def _round_up(a, b):
    return (a + b - 1) // b * b


def _nearest_embed_kernel(x_ref, emb_g_ref, emb_t_ref, ee_ref, res_ref, idx_ref):
    # x_ref    : (1, D, tn)  input tile; channels on sublanes, positions on lanes
    # emb_g_ref: (D, Kp)     codebook in the gather dtype (bf16 iff output dtype is bf16)
    # emb_t_ref: (Kp, D)     pre-transposed codebook in the distance dtype
    # ee_ref   : (Kp, 1)     0.5*||e_k||^2 (f32); +inf on padded codebook rows
    # res_ref  : (1, D, tn)  quantized vectors, lane-dense on tn
    # idx_ref  : (1, 1, tn)  argmin indices, lane-dense on tn
    emb_t = emb_t_ref[...]                                           # (Kp, D)
    x = x_ref[0].astype(emb_t.dtype)                                 # (D, tn)

    # score[k, n] = e_k . x_n - 0.5*||e_k||^2 ; argmax_k == argmin_k ||x_n - e_k||^2
    # (the per-column ||x||^2 term is constant over k and was dropped).
    xe = jnp.dot(emb_t, x, preferred_element_type=jnp.float32)       # (Kp, tn)  MXU
    score = xe - ee_ref[...]                                         # (Kp, tn)  VPU; pad rows -> -inf
    # jnp.argmax picks the first maximal index, matching torch.argmin's first-index
    # rule whenever scores tie exactly.
    amin = jnp.argmax(score, axis=0).astype(jnp.int32)               # (tn,)
    idx_ref[...] = amin[None, None, :]

    # Gather selected embeddings as one-hot @ codebook on the MXU, directly in the
    # (D, tn) output layout.  The (Kp,1) == (1,tn) compare broadcasts inside the cmp
    # (no full (Kp, tn) int32 iota temporary) and the one-hot is built directly in the
    # gather dtype (bf16 halves its bytes when the output is bf16).
    emb_g = emb_g_ref[...]                                           # (D, Kp)
    kp = emb_t.shape[0]
    iota_k = jax.lax.broadcasted_iota(jnp.int32, (kp, 1), 0)         # (Kp, 1)
    onehot = (iota_k == amin[None, :]).astype(emb_g.dtype)           # (Kp, tn)
    res_t = jnp.dot(emb_g, onehot, preferred_element_type=jnp.float32)  # (D, tn)  MXU
    res_ref[...] = res_t[None].astype(res_ref.dtype)


@functools.partial(jax.jit, static_argnames=("tile_n", "dist_dtype"))
def nearest_embed_pallas(x, emb, *, tile_n=1024, dist_dtype=None):
    """VQ nearest-embedding forward, matching NearestEmbedFunc.forward.

    x   : (B, D, *spatial), e.g. (B, emb_dim, H, W).
    emb : (D, K) codebook.
    Returns (result, argmin): result (B, D, *spatial) in x.dtype, argmin (B, *spatial) int32.

    dist_dtype: dtype used only for the distance matmul.  None -> f32 for f32 inputs
    (exact), bf16 for bf16 inputs.  jnp.bfloat16 is the intended perf path on
    v5e/v6e/v7x (f32 MXU matmuls are emulated).  Gathered vectors are always exact
    codebook rows (in the output dtype) either way.
    """
    B, D = x.shape[0], x.shape[1]
    spatial = tuple(x.shape[2:])
    if emb.shape[0] != D:
        raise ValueError(
            f"input.size(1) ({D}) must be equal to emb.size(0) ({emb.shape[0]})")
    K = emb.shape[1]

    # ---- dtypes --------------------------------------------------------------
    is_bf16_out = x.dtype == jnp.bfloat16
    if dist_dtype is not None:
        dd = np.dtype(dist_dtype)
    else:
        dd = np.dtype(jnp.bfloat16) if is_bf16_out else np.dtype(np.float32)
    # Gather dtype: bf16 is bit-identical to the f32 path when the output is bf16
    # (bf16 one-hot x bf16 codebook, f32 accumulate), at half the MXU cost.
    gd = np.dtype(jnp.bfloat16) if is_bf16_out else np.dtype(np.float32)

    # ---- K padding (sublane / lane friendliness; sentinel rows can never win) --
    Kp = _round_up(K, 128) if K >= 128 else _round_up(K, 8)

    # ---- tile_n / spatial padding ---------------------------------------------
    L = int(np.prod(spatial)) if spatial else 1
    L_lane = _round_up(L, 128)
    tn = min(int(tile_n), L_lane)
    tn = _round_up(max(tn, 128), 128)
    # Stopgap for huge codebooks: keep the per-tile (Kp, tn) f32 temporaries under
    # ~24 MiB so they don't blow v7x's 64 MiB VMEM at tn=1024.
    # TODO(synk): replace with an in-kernel K-chunk loop carrying (best_score, best_idx)
    # scratch + chunked one-hot gather accumulation for K >~ 2-4K entries.
    while tn > 256 and 4 * Kp * tn * 4 > 24 * 1024 * 1024:
        tn = _round_up(tn // 2, 128)
    # Megacore occupancy: keep >= 2 grid steps so both v7x TensorCores get work.
    while tn > 128 and B * pl.cdiv(L, tn) < 2:
        tn = _round_up(tn // 2, 128)
    L_pad = _round_up(L, tn)
    n_tiles = L_pad // tn

    x_r = x.reshape(B, D, L)                        # free reshape, no transpose
    if L_pad != L:
        # Padded columns are scored and sliced away; harmless wasted work on the last tile.
        x_r = jnp.pad(x_r, ((0, 0), (0, 0), (0, L_pad - L)))

    # ---- codebook operands (hoisted: transpose, norms, casts, padding) ---------
    emb_f32 = emb.astype(jnp.float32)                               # (D, K)
    ee_half = 0.5 * jnp.sum(emb_f32 * emb_f32, axis=0)              # (K,)
    if Kp != K:
        emb_f32 = jnp.pad(emb_f32, ((0, 0), (0, Kp - K)))
        # +inf => score = 0 - inf = -inf: padded codes can never win the argmax.
        ee_half = jnp.pad(ee_half, (0, Kp - K), constant_values=jnp.inf)
    emb_g = emb_f32.astype(gd)                                      # (D, Kp)  gather operand
    emb_t = emb_f32.T.astype(dd)                                    # (Kp, D)  score operand
    ee_half = ee_half[:, None]                                      # (Kp, 1)

    # ---- VMEM budget (generation-aware) -----------------------------------------
    x_bytes = np.dtype(x.dtype).itemsize
    est = (
        2 * D * tn * x_bytes                                  # x tiles (double-buffered)
        + 2 * D * tn * x_bytes                                # res tiles
        + 2 * tn * 4                                          # idx tiles
        + D * Kp * gd.itemsize + Kp * D * dd.itemsize + Kp * 4  # codebook (single-buffered)
        + 3 * Kp * tn * 4 + Kp * tn * gd.itemsize             # xe/score (+slack) f32, one-hot
    )
    try:
        vmem_cap = int(pltpu.get_tpu_info().vmem_capacity_bytes)
    except Exception:
        vmem_cap = 64 * 1024 * 1024   # v7x per-TC size: a safe floor on every generation
    usable = (vmem_cap * 4) // 5      # ~20% headroom for Mosaic internal scratch / spills
    vmem_limit = int(min(usable, max(32 * 1024 * 1024, 2 * est)))

    # ---- cost hint for the XLA scheduler ----------------------------------------
    flops = 4 * B * n_tiles * Kp * D * tn                  # two (Kp x D x tn) MACs per tile
    bytes_accessed = (
        2 * B * D * L_pad * x_bytes + B * L_pad * 4
        + D * Kp * gd.itemsize + Kp * D * dd.itemsize + Kp * 4
    )
    cost = pl.CostEstimate(flops=flops, transcendentals=0, bytes_accessed=bytes_accessed)

    resident = pl.Buffered(buffer_count=1)   # fetched once; no second VMEM buffer needed

    res3, idx3 = pl.pallas_call(
        _nearest_embed_kernel,
        out_shape=(
            jax.ShapeDtypeStruct((B, D, L_pad), x.dtype),
            jax.ShapeDtypeStruct((B, 1, L_pad), jnp.int32),
        ),
        grid_spec=pltpu.PrefetchScalarGridSpec(
            num_scalar_prefetch=0,
            grid=(B, n_tiles),
            in_specs=[
                pl.BlockSpec((1, D, tn), lambda b, i: (b, 0, i)),                       # x tile
                pl.BlockSpec((D, Kp), lambda b, i: (0, 0), pipeline_mode=resident),     # emb (gather)
                pl.BlockSpec((Kp, D), lambda b, i: (0, 0), pipeline_mode=resident),     # emb^T (score)
                pl.BlockSpec((Kp, 1), lambda b, i: (0, 0), pipeline_mode=resident),     # 0.5*||e||^2
            ],
            out_specs=[
                pl.BlockSpec((1, D, tn), lambda b, i: (b, 0, i)),   # result, lane-dense
                pl.BlockSpec((1, 1, tn), lambda b, i: (b, 0, i)),   # argmin, lane-dense
            ],
        ),
        compiler_params=pltpu.CompilerParams(
            dimension_semantics=("parallel", "parallel"),
            vmem_limit_bytes=vmem_limit,
        ),
        cost_estimate=cost,
    )(x_r, emb_g, emb_t, ee_half)

    result = res3[:, :, :L].reshape((B, D) + spatial)
    argmin = idx3[:, 0, :L].reshape((B,) + spatial)
    return result, argmin


def make_init_weight(num_embeddings, embeddings_dim):
    """Deterministic init matching NearestEmbed.__init__: column i = linspace(-1,1)[i]."""
    co = np.linspace(-1.0, 1.0, num_embeddings)
    w = np.ones((embeddings_dim, num_embeddings), dtype=np.float32)
    for i in range(num_embeddings):
        w[:, i] = co[i]
    return jnp.asarray(w)


if __name__ == "__main__":
    # Small shapes consistent with the module: x (B, emb_dim, H, W), emb (emb_dim, K).
    B, D, H, W = 2, 4, 16, 16
    K = 16  # num_embeddings

    key = jax.random.PRNGKey(0)
    x = jax.random.normal(key, (B, D, H, W), dtype=jnp.float32)
    emb = make_init_weight(K, D)

    # ---- Exact path (f32 scoring, f32 gather): matches the PyTorch forward. ----
    result, argmin = nearest_embed_pallas(x, emb)
    jax.block_until_ready((result, argmin))

    # Pure-JAX reference (mirrors the torch forward).
    x_exp = x[:, :, :, :, None]                       # (B, D, H, W, 1)
    emb_exp = emb[None, :, None, None, :]             # (1, D, 1, 1, K)
    dist = jnp.linalg.norm(x_exp - emb_exp, ord=2, axis=1)   # (B, H, W, K)
    argmin_ref = jnp.argmin(dist, axis=-1)
    result_ref = jnp.transpose(
        emb.T[argmin_ref.reshape(-1)].reshape(B, H, W, D), (0, 3, 1, 2))

    assert result.shape == (B, D, H, W)
    assert argmin.shape == (B, H, W)
    np.testing.assert_array_equal(np.asarray(argmin), np.asarray(argmin_ref))
    np.testing.assert_allclose(np.asarray(result), np.asarray(result_ref),
                               rtol=1e-5, atol=1e-5)

    # ---- Perf path 1: bf16 distance matmul on f32 activations (opt-in). Argmin may
    # flip only on near-ties; returned vectors are always exact codebook rows
    # consistent with the returned argmin.
    result_bf, argmin_bf = nearest_embed_pallas(x, emb, dist_dtype=jnp.bfloat16)
    jax.block_until_ready((result_bf, argmin_bf))
    gathered = jnp.transpose(
        emb.T[argmin_bf.reshape(-1)].reshape(B, H, W, D), (0, 3, 1, 2))
    assert result_bf.shape == (B, D, H, W) and argmin_bf.shape == (B, H, W)
    np.testing.assert_allclose(np.asarray(result_bf), np.asarray(gathered),
                               rtol=1e-6, atol=1e-6)

    # ---- Perf path 2: bf16 activations -> bf16 score and bf16 one-hot gather by
    # default; gathered rows are bit-identical to round-to-bf16 of the codebook rows.
    x16 = x.astype(jnp.bfloat16)
    result16, argmin16 = nearest_embed_pallas(x16, emb)
    jax.block_until_ready((result16, argmin16))
    gathered16 = jnp.transpose(
        emb.astype(jnp.bfloat16).T[argmin16.reshape(-1)].reshape(B, H, W, D),
        (0, 3, 1, 2))
    np.testing.assert_array_equal(
        np.asarray(result16.astype(jnp.float32)),
        np.asarray(gathered16.astype(jnp.float32)))

    print("KERNEL_OK")
</pallas_src>

<mosaic_0001>
module attributes {stable_mosaic.version = 11 : i64} {
  func.func @_nearest_embed_kernel(%arg0: i32, %arg1: i32, %arg2: memref<1x4x256xf32, #tpu.memory_space<vmem>>, %arg3: memref<4x16xf32, #tpu.memory_space<vmem>>, %arg4: memref<16x4xf32, #tpu.memory_space<vmem>>, %arg5: memref<16x1xf32, #tpu.memory_space<vmem>>, %arg6: memref<1x4x256xf32, #tpu.memory_space<vmem>>, %arg7: memref<1x1x256xi32, #tpu.memory_space<vmem>>) attributes {dimension_semantics = [#tpu.dimension_semantics<parallel>, #tpu.dimension_semantics<parallel>], iteration_bounds = array<i64: 2, 1>, scalar_prefetch = 0 : i64, scratch_operands = 0 : i64, tpu.core_type = #tpu.core_type<tc>, window_params = [{transform_indices = @transform_0, window_bounds = array<i64: 1, 4, 256>}, {pipeline_mode = #tpu.pipeline_mode<synchronous>, transform_indices = @transform_1, window_bounds = array<i64: 4, 16>}, {pipeline_mode = #tpu.pipeline_mode<synchronous>, transform_indices = @transform_2, window_bounds = array<i64: 16, 4>}, {pipeline_mode = #tpu.pipeline_mode<synchronous>, transform_indices = @transform_3, window_bounds = array<i64: 16, 1>}, {transform_indices = @transform_4, window_bounds = array<i64: 1, 4, 256>}, {transform_indices = @transform_5, window_bounds = array<i64: 1, 1, 256>}]} {
    %c0 = arith.constant 0 : index
    %c0_0 = arith.constant 0 : index
    %0 = vector.load %arg4[%c0, %c0_0] : memref<16x4xf32, #tpu.memory_space<vmem>>, vector<16x4xf32>
    %c0_1 = arith.constant 0 : index
    %c0_2 = arith.constant 0 : index
    %c0_3 = arith.constant 0 : index
    %1 = vector.load %arg2[%c0_1, %c0_2, %c0_3] : memref<1x4x256xf32, #tpu.memory_space<vmem>>, vector<1x4x256xf32>
    %2 = vector.shape_cast %1 : vector<1x4x256xf32> to vector<4x256xf32>
    %cst = arith.constant dense<0.000000e+00> : vector<16x256xf32>
    %3 = tpu.matmul %0, %2, %cst {dimension_numbers = #tpu.dot_dimension_numbers<[1], [0], [0], [1], [0, 0, 1, 1], [], []>} : vector<16x4xf32>, vector<4x256xf32>, vector<16x256xf32> -> vector<16x256xf32>
    %c0_4 = arith.constant 0 : index
    %c0_5 = arith.constant 0 : index
    %4 = vector.load %arg5[%c0_4, %c0_5] : memref<16x1xf32, #tpu.memory_space<vmem>>, vector<16x1xf32>
    %5 = vector.broadcast %4 : vector<16x1xf32> to vector<16x256xf32>
    %6 = arith.subf %3, %5 : vector<16x256xf32>
    %7 = tpu.reduce_index %6 {axis = 0 : i32, kind = #tpu.reduction_kind<arg_max>} : vector<16x256xf32> -> vector<256xi32>
    %8 = vector.shape_cast %7 : vector<256xi32> to vector<1x1x256xi32>
    %c0_6 = arith.constant 0 : index
    %c0_7 = arith.constant 0 : index
    %c0_8 = arith.constant 0 : index
    %9 = vector.load %arg7[%c0_6, %c0_7, %c0_8] : memref<1x1x256xi32, #tpu.memory_space<vmem>>, vector<1x1x256xi32>
    tpu.vector_store %arg7[%c0_6, %c0_7, %c0_8], %8 {strides = array<i32>} : memref<1x1x256xi32, #tpu.memory_space<vmem>>, vector<1x1x256xi32>,
    %c0_9 = arith.constant 0 : index
    %c0_10 = arith.constant 0 : index
    %10 = vector.load %arg3[%c0_9, %c0_10] : memref<4x16xf32, #tpu.memory_space<vmem>>, vector<4x16xf32>
    %11 = tpu.iota {dimensions = array<i32: 0>} : vector<16x1xi32>
    %12 = vector.shape_cast %7 : vector<256xi32> to vector<1x256xi32>
    %13 = vector.broadcast %11 : vector<16x1xi32> to vector<16x256xi32>
    %14 = vector.broadcast %12 : vector<1x256xi32> to vector<16x256xi32>
    %15 = arith.cmpi eq, %13, %14 : vector<16x256xi32>
    %16 = arith.extui %15 : vector<16x256xi1> to vector<16x256xi32>
    %17 = arith.sitofp %16 : vector<16x256xi32> to vector<16x256xf32>
    %cst_11 = arith.constant dense<0.000000e+00> : vector<4x256xf32>
    %18 = tpu.matmul %10, %17, %cst_11 {dimension_numbers = #tpu.dot_dimension_numbers<[1], [0], [0], [1], [0, 0, 1, 1], [], []>} : vector<4x16xf32>, vector<16x256xf32>, vector<4x256xf32> -> vector<4x256xf32>
    %19 = vector.shape_cast %18 : vector<4x256xf32> to vector<1x4x256xf32>
    %c0_12 = arith.constant 0 : index
    %c0_13 = arith.constant 0 : index
    %c0_14 = arith.constant 0 : index
    %20 = vector.load %arg6[%c0_12, %c0_13, %c0_14] : memref<1x4x256xf32, #tpu.memory_space<vmem>>, vector<1x4x256xf32>
    tpu.vector_store %arg6[%c0_12, %c0_13, %c0_14], %19 {strides = array<i32>} : memref<1x4x256xf32, #tpu.memory_space<vmem>>, vector<1x4x256xf32>,
    return
  }
  func.func @transform_0(%arg0: i32, %arg1: i32) -> (i32, i32, i32) {
    %c0_i32 = arith.constant 0 : i32
    %c0_i32_0 = arith.constant 0 : i32
    return %arg0, %c0_i32, %arg1 : i32, i32, i32
  }
  func.func @transform_1(%arg0: i32, %arg1: i32) -> (i32, i32) {
    %c0_i32 = arith.constant 0 : i32
    %c0_i32_0 = arith.constant 0 : i32
    %c0_i32_1 = arith.constant 0 : i32
    return %c0_i32, %c0_i32_0 : i32, i32
  }
  func.func @transform_2(%arg0: i32, %arg1: i32) -> (i32, i32) {
    %c0_i32 = arith.constant 0 : i32
    %c0_i32_0 = arith.constant 0 : i32
    %c0_i32_1 = arith.constant 0 : i32
    return %c0_i32, %c0_i32_0 : i32, i32
  }
  func.func @transform_3(%arg0: i32, %arg1: i32) -> (i32, i32) {
    %c0_i32 = arith.constant 0 : i32
    %c0_i32_0 = arith.constant 0 : i32
    %c0_i32_1 = arith.constant 0 : i32
    return %c0_i32, %c0_i32_0 : i32, i32
  }
  func.func @transform_4(%arg0: i32, %arg1: i32) -> (i32, i32, i32) {
    %c0_i32 = arith.constant 0 : i32
    %c0_i32_0 = arith.constant 0 : i32
    return %arg0, %c0_i32, %arg1 : i32, i32, i32
  }
  func.func @transform_5(%arg0: i32, %arg1: i32) -> (i32, i32, i32) {
    %c0_i32 = arith.constant 0 : i32
    %c0_i32_0 = arith.constant 0 : i32
    return %arg0, %c0_i32, %arg1 : i32, i32, i32
  }
}

</mosaic_0001>

<bundles_post_ra>
// kernel: squeeze.1
= control target key start
LH: loop header
LB: loop body
LE: loop exit
PB: predicated region body
PF: predicated region fallthrough
CT: control target
= control target key end

     0   :  { %s144_s0 = inlined_call_operand.vmem [shape: s32[2,256], index: 0, kind: input, shape index: {}]   ;;  %s145_s1 = inlined_call_operand.hbm [shape: s32[2,16,16], index: 1, kind: output, shape index: {}]  }
   0x1   :  { %v73_v0 = vld [vmem:[%s144_s0 + $0x2] sm:$0x3]  ;;  %v9_v1 = vld [vmem:[%s144_s0] sm:$0x3] }
   0x2   :  { %8 = vst [vmem:[#allocation2 + $0x8] sm:$0x3] %v73_v0 }
   0x3   :  { %10 = vst [vmem:[#allocation2] sm:$0x3] %v9_v1 }
   0x4   :  { %2 = vsyncpa [#allocation1], 0  ;;  %s108_s0 = smov 112   ;;  %s109_s10 = smov 80   ;;  %vm12_vm0 = vcmask 130048  }
   0x5   :  { %s110_s11 = smov 48   ;;  %s111_s12 = smov 96  }
   0x6   :  { %s112_s13 = smov 64   ;;  %s113_s14 = smov 32  }
   0x7   :  { %s114_s15 = smov 16   ;;  %s115_s16 = smov [#allocation0]  }
   0x8   :  { %s64_s17 = sshll.u32 %s115_s16, 4  ;;  %s66_s1 = sshll.u32 %s145_s1, 4  ;;  %s65_s17 = int_to_ptr.vmem [resolvable:$true] %s64_s17  ;;  %s67_s1 = int_to_ptr.hbm [resolvable:$true] %s66_s1 }
   0x9   :  { %v15_v5 = vld [vmem:[#allocation2 + $0x8] sm:$0x3]  }
   0xa   :  { %v19_v2 = vld.sshfl [vmem:[#allocation2] sm:$0xff pattern:$0x99999180]   ;;  %18 = vst.msk [vmem:[#allocation0 + $0x8] ss:$16 sm:$0x3] %vm12_vm0, %v15_v5  }
   0xb   :  { %20 = vrot.lane.b32.xlu0 %v19_v2, %s108_s0  ;;  %32 = vrot.lane.b32.xlu1 %v19_v2, %s109_s10  ;;  %v11_v4 = vld [vmem:[#allocation2] sm:$0x3]  }
   0xc   :  { %44 = vrot.lane.b32.xlu2 %v19_v2, %s110_s11  ;;  %13 = vst.msk [vmem:[#allocation0] ss:$16 sm:$0x3] %vm12_vm0, %v11_v4  }
  0x13   :  { %26 = vrot.lane.b32.xlu0 %v19_v2, %s111_s12  ;;  %38 = vrot.lane.b32.xlu1 %v19_v2, %s112_s13 }
  0x14   :  { %50 = vrot.lane.b32.xlu2 %v19_v2, %s113_s14 }
  0x1b   :  { %56 = vrot.lane.b32.xlu0 %v19_v2, %s114_s15 }
  0x66   :  { %v45_v3 = vpop.permute.xlu2 %44  }
  0x67   :  { %48 = vst.msk [vmem:[#allocation0 + $0x5] ss:$8 sm:$0xf] %vm12_vm0, %v45_v3  }
  0x6e   :  { %v51_v6 = vpop.permute.xlu2 %50  }
  0x6f   :  { %54 = vst.msk [vmem:[#allocation0 + $0x6] ss:$8 sm:$0xf] %vm12_vm0, %v51_v6  }
  0x7d   :  { %v21_v7 = vpop.permute.xlu0 %20   ;;  %v33_v8 = vpop.permute.xlu1 %32  }
  0x7e   :  { %24 = vst.msk [vmem:[#allocation0 + $0x1] ss:$8 sm:$0xf] %vm12_vm0, %v21_v7  }
  0x7f   :  { %36 = vst.msk [vmem:[#allocation0 + $0x3] ss:$8 sm:$0xf] %vm12_vm0, %v33_v8  }
  0x85   :  { %v27_v9 = vpop.permute.xlu0 %26   ;;  %v39_v10 = vpop.permute.xlu1 %38  }
  0x86   :  { %30 = vst.msk [vmem:[#allocation0 + $0x2] ss:$8 sm:$0xf] %vm12_vm0, %v27_v9  }
  0x87   :  { %42 = vst.msk [vmem:[#allocation0 + $0x4] ss:$8 sm:$0xf] %vm12_vm0, %v39_v10  }
  0x8d   :  { %v57_v11 = vpop.permute.xlu0 %56  }
  0x8e   :  { %60 = vst.msk [vmem:[#allocation0 + $0x7] ss:$8 sm:$0xf] %vm12_vm0, %v57_v11  }
  0x8f   :  { %69 = dma.vmem_to_hbm [thread:$0]  %s65_s17, 512, %s67_s1, [#allocation1]  }
  0x90   :  { %106 = dma.done.wait [#allocation1], 512  }
  0x91   :  { %107 = vsyncadd [#allocation1], 4294966784 }
  0x92   :  { %72 = vsyncpa [#allocation1], 1 }

// kernel: nearest_embed_pallas.1
= control target key start
LH: loop header
LB: loop body
LE: loop exit
PB: predicated region body
PF: predicated region fallthrough
CT: control target
= control target key end

     0   :  { %s721_s18 = smov 0   ;;  %s723_s19 = smov 0   ;;  %s783_s0 = inlined_call_operand.vmem [shape: f32[2,4,256], index: 0, kind: input, shape index: {}]   ;;  %s784_s1 = inlined_call_operand.vmem [shape: f32[4,16], index: 1, kind: input, shape index: {}]   ;;  %s785_s2 = inlined_call_operand.vmem [shape: f32[16,4], index: 2, kind: input, shape index: {}]   ;;  %s786_s3 = inlined_call_operand.vmem [shape: f32[16,1], index: 3, kind: input, shape index: {}]   ;;  %s787_s4 = inlined_call_operand.vmem [shape: f32[2,4,256], index: 4, kind: output, shape index: {0}]   ;;  %s788_s5 = inlined_call_operand.vmem [shape: s32[2,1,256], index: 5, kind: output, shape index: {1}]  }
   0x1   :  { %s725_s20 = smov 0  }
   0x2 LB: > { %s28_s21 = sadd.s32 1, %s683_s19  ;;  %p612_p0 = scmp.ge.s32.totalorder %s687_s20, 1  ;;  %s687_s20 = sphi %s725_s20, %s16_s20   ;;  %s683_s19 = sphi %s723_s19, %s790_s19   ;;  %s679_s18 = sphi %s721_s18, %s789_s18  }
   0x3   : > { %p30_p1 = scmp.ge.s32.totalorder %s28_s21, 2  ;;  %p213_p2 = scmp.lt.s32.totalorder %s687_s20, 3 }
   0x5   : > { %s792_s21 = smov (%p30_p1, %s28_s21), 0  ;;  %p214_p3 = pnand %p612_p0, %p213_p2 }
   0x6   : > { %p258_p4 = scmp.lt.s32.totalorder (!%p214_p3), %s679_s18, 1 }
   0x7   : > { %217 = sbr.rel (%p214_p3) target bundleno = 317 (0x13d), region = 36 }
   0xc   : > { %v351_v0 = vld [vmem:[%s786_s3] sm:$0xff]  ;;  %v689_v1 = vmov 0   ;;  %s794_s18 = smov (!%p258_p4, %s679_s18), 1  ;;  %v352_v3 = vld [vmem:[%s786_s3 + $0x8] sm:$0xff]  ;;  %vm300_vm0 = vcmask 1043456   ;;  %vm293_vm1 = vcmask 31744   ;;  %v367_v11 = vlaneseq }
   0xd   : > { %664 = vset.pattern.permute.xlu0 %v689_v1  ;;  %s636_s24 = sshll.u32 %s794_s18, 3  ;;  %v286_v4 = vld [vmem:[%s785_s2] sm:$0xff]  ;;  %v287_v7 = vld [vmem:[%s785_s2 + $0x8] sm:$0xff]  ;;  %s617_s9 = sshll.u32 %s794_s18, 1  ;;  %vm405_vm10 = vcmask 1040384   ;;  %v690_v51 = vmov 1.0  }
   0xe   : > { %355 = vperm.xlu0 %664, %v351_v0   ;;  %s265_s27 = scalar_lea.vmem %s783_s0, %s636_s24  ;;  %v368_v12 = vshrl.u32 %v367_v11, 7  ;;  %s284_s12 = scalar_lea.vmem %s788_s5, %s617_s9  ;;  %vm409_vm11 = vcmp.lt.s32.totalorder %v367_v11, 256  ;;  %v412_v52 = vld [vmem:[%s784_s1] sm:$0xf]  ;;  %vm427_vm14 = vcmask 130048  }
   0xf   : > { %v288_v2 = vld [vmem:[%s265_s27] sm:$0xff]  ;;  %s275_s17 = scalar_lea.vmem %s787_s4, %s636_s24 }
  0x10   : > { %290 = vst [vmem:[#allocation1] ss:$2 sm:$0xff] %v288_v2  ;;  %v369_v15 = vadd.s32 8, %v368_v12 }
  0x16   : > { %360 = vperm.xlu0 %664, %v352_v3  }
  0x17   : > { %v291_v5 = vld.sshfl [vmem:[#allocation1] sm:$0xff pattern:$0x75316420]  ;;  %v292_v6 = vld.sshfl [vmem:[#allocation1 + $0x8] sm:$0xff pattern:$0x75316420] }
  0x18   : > { %618 = vmatpush.msk.msra.mxu0 %vm300_vm0, %v291_v5  ;;  %621 = vmatpush.msk.msra.mxu1 %vm300_vm0, %v292_v6 }
  0x19   : > { %619 = vmatmul.msk.f32.vlgmr.msra.gmra.mxu0 %vm293_vm1, %v286_v4  ;;  %622 = vmatmul.msk.f32.vlgmr.msra.gmra.mxu1 %vm293_vm1, %v286_v4 }
  0x21   : > { %620 = vmatmul.msk.f32.gmra.mxu0 %vm293_vm1, %v287_v7  ;;  %623 = vmatmul.msk.f32.gmra.mxu1 %vm293_vm1, %v287_v7 }
  0x80   : > { %v356_v8 = vpop.permute.xlu0 %355 }
  0x88   : > { %v361_v13 = vpop.permute.xlu0 %360 }
  0x96   : > { %v322_v9 = vpop.f32.mrf.mxu0  ;;  %v345_v10 = vpop.f32.mrf.mxu1 }
  0x97   : > { %v363_v17 = vsub.f32 %v322_v9, %v356_v8  ;;  %v364_v18 = vsub.f32 %v345_v10, %v356_v8 }
  0x9e   : > { %v325_v14 = vpop.f32.mrf.mxu0  ;;  %v348_v16 = vpop.f32.mrf.mxu1 }
  0x9f   : > { %v365_v19 = vsub.f32 %v325_v14, %v361_v13  ;;  %v366_v20 = vsub.f32 %v348_v16, %v361_v13 }
  0xa1   : > { %vm370_vm2 = vcmp.ge.f32.partialorder %v363_v17, %v365_v19  ;;  %vm387_vm3 = vcmp.ge.f32.partialorder %v364_v18, %v366_v20 }
  0xa2   : > { %v371_v21 = vsel %vm370_vm2, %v363_v17, %v365_v19  ;;  %v372_v22 = vsel %vm370_vm2, %v368_v12, %v369_v15  ;;  %v388_v23 = vsel %vm387_vm3, %v364_v18, %v366_v20  ;;  %v389_v24 = vsel %vm387_vm3, %v368_v12, %v369_v15 }
  0xa3   : > { %v373_v25 = vrot.slane %v371_v21, 4  ;;  %v374_v26 = vrot.slane %v372_v22, 4  ;;  %v390_v27 = vrot.slane %v388_v23, 4  ;;  %v391_v28 = vrot.slane %v389_v24, 4 }
  0xa5   : > { %vm375_vm4 = vcmp.ge.f32.partialorder %v371_v21, %v373_v25  ;;  %vm392_vm5 = vcmp.ge.f32.partialorder %v388_v23, %v390_v27 }
  0xa6   : > { %v376_v29 = vsel %vm375_vm4, %v371_v21, %v373_v25  ;;  %v377_v30 = vsel %vm375_vm4, %v372_v22, %v374_v26  ;;  %v393_v31 = vsel %vm392_vm5, %v388_v23, %v390_v27  ;;  %v394_v32 = vsel %vm392_vm5, %v389_v24, %v391_v28 }
  0xa7   : > { %v378_v33 = vrot.slane %v376_v29, 6  ;;  %v379_v34 = vrot.slane %v377_v30, 6  ;;  %v395_v35 = vrot.slane %v393_v31, 6  ;;  %v396_v36 = vrot.slane %v394_v32, 6 }
  0xa9   : > { %vm380_vm6 = vcmp.ge.f32.partialorder %v376_v29, %v378_v33  ;;  %vm397_vm7 = vcmp.ge.f32.partialorder %v393_v31, %v395_v35 }
  0xaa   : > { %v381_v37 = vsel %vm380_vm6, %v376_v29, %v378_v33  ;;  %v382_v38 = vsel %vm380_vm6, %v377_v30, %v379_v34  ;;  %v398_v39 = vsel %vm397_vm7, %v393_v31, %v395_v35  ;;  %v399_v40 = vsel %vm397_vm7, %v394_v32, %v396_v36 }
  0xab   : > { %v383_v41 = vrot.slane %v381_v37, 7  ;;  %v384_v42 = vrot.slane %v382_v38, 7  ;;  %v400_v43 = vrot.slane %v398_v39, 7  ;;  %v401_v44 = vrot.slane %v399_v40, 7 }
  0xad   : > { %vm385_vm8 = vcmp.ge.f32.partialorder %v381_v37, %v383_v41  ;;  %vm402_vm9 = vcmp.ge.f32.partialorder %v398_v39, %v400_v43 }
  0xae   : > { %v386_v45 = vsel %vm385_vm8, %v382_v38, %v384_v42  ;;  %v403_v46 = vsel %vm402_vm9, %v399_v40, %v401_v44 }
  0xaf   : > { %v413_v47 = vperm.slane %v386_v45, 0  ;;  %v404_v48 = vrot.slane %v403_v46, 7  ;;  %v414_v49 = vperm.slane %v403_v46, 0 }
  0xb1   : > { %vm417_vm12 = vcmp.eq.s32.totalorder %v369_v15, %v413_v47  ;;  %v406_v50 = vsel %vm405_vm10, %v386_v45, %v404_v48  ;;  %vm418_vm13 = vcmp.eq.s32.totalorder %v369_v15, %v414_v49  ;;  %vm415_vm15 = vcmp.eq.s32.totalorder %v368_v12, %v413_v47 }
  0xb2   : > { %628 = vmatpush.msk.msra.mxu2 %vm417_vm12, %v690_v51  ;;  %411 = vst.msk [vmem:[%s284_s12] sm:$0x3] %vm409_vm11, %v406_v50  ;;  %631 = vmatpush.msk.msra.mxu3 %vm418_vm13, %v690_v51  ;;  %vm416_vm1 = vcmp.eq.s32.totalorder %v368_v12, %v414_v49 }
  0xb4   : > { %629 = vmatpush.msk.msra.mxu2 %vm415_vm15, %v690_v51  ;;  %632 = vmatpush.msk.msra.mxu3 %vm416_vm1, %v690_v51 }
  0xb5   : > { %633 = vmatmul.msk.f32.vlgmr.msra.gmra.mxu3 %vm427_vm14, %v412_v52  ;;  %630 = vmatmul.msk.f32.vlgmr.msra.gmra.mxu2 %vm427_vm14, %v412_v52 }
 0x138   : > { %v468_v53 = vpop.f32.mrf.mxu3  ;;  %v448_v54 = vpop.f32.mrf.mxu2 }
 0x139   : > { %v473_v55 = vrot.slane %v468_v53, 4 }
 0x13b   : > { %v474_v56 = vsel %vm300_vm0, %v448_v54, %v473_v55 }
 0x13c   : > { %476 = vst [vmem:[%s275_s17] sm:$0xff] %v474_v56 }
 0x13d PF: > { %s16_s20 = sadd.s32 1, %s687_s20   ;;  %s789_s18 = smov %s683_s19 }
 0x13e   : > { %p13_p5 = scmp.ge.s32.totalorder %s16_s20, 4   ;;  %s790_s19 = smov %s792_s21 }
 0x140   :  { %15 = sbr.rel (!%p13_p5) target bundleno = 2 (0x2), region = 78 }

</bundles_post_ra>
